<compile_context>
chip_gen: v7x
topology: tpu7x:2x2x1
jax: 0.10.0
libtpu: 0.0.40
codegen_flags: <defaults>
</compile_context>

<pallas_src>
import functools

import jax
import jax.numpy as jnp
from jax.experimental import pallas as pl
from jax.experimental.pallas import tpu as pltpu

_LANE = 128
_PALLAS_MIN_BYTES = 4 * 1024 * 1024   # below this, XLA's fused reduce wins


def _cdiv(a, b):
    return -(-a // b)


def _round_up(x, m):
    return _cdiv(x, m) * m


def _acc_dtype(dtype):
    if jnp.issubdtype(dtype, jnp.floating):
        return jnp.float32
    if jnp.issubdtype(dtype, jnp.integer):
        # TODO(synk): torch.sum promotes sub-32-bit ints to int64; int32 accumulation here.
        return jnp.int32
    return dtype


def _sublane_tile(dtype):
    # Native sublane tile: 8 for 4-byte, 16 for 2-byte, 32 for 1-byte dtypes.
    return max(8, 32 // max(1, jnp.dtype(dtype).itemsize))


def _largest_divisor_leq(x, cap):
    x = int(x)
    cap = max(1, min(x, int(cap)))
    for d in range(cap, 0, -1):
        if x % d == 0:
            return d
    return 1


def _vmem_block_bytes(block, dtype):
    dims = list(block)
    if len(dims) >= 1:
        dims[-1] = _round_up(dims[-1], _LANE)
    if len(dims) >= 2:
        dims[-2] = _round_up(dims[-2], _sublane_tile(dtype))
    total = jnp.dtype(dtype).itemsize
    for d in dims:
        total *= int(d)
    return total


def _tpu_params():
    """Return (vmem_capacity_bytes, tensorcores_per_chip), best-effort."""
    vmem_cap = None
    num_tc = None
    try:
        info = pltpu.get_tpu_info()
        cap = getattr(info, "vmem_capacity_bytes", None)
        if cap:
            vmem_cap = int(cap)
        for attr in ("num_cores", "core_count", "num_tensorcores",
                     "tensorcores_per_chip", "num_cores_per_chip"):
            v = getattr(info, attr, None)
            if v:
                num_tc = int(v)
                break
    except Exception:
        pass
    if vmem_cap is None:
        vmem_cap = 64 * 1024 * 1024          # assume the tightest chip (v7x)
    if num_tc is None:
        # Heuristic: 64 MiB-VMEM chips (v7x) have 2 TensorCores per chip.
        num_tc = 2 if vmem_cap <= 64 * 1024 * 1024 else 1
    return vmem_cap, num_tc


def _sum_c_direct_kernel(acc_dtype, x_ref, o_ref):
    # Reduce the channel axis (axis 1) of the block; accumulate directly in o_ref.
    k = pl.program_id(2)
    part = jnp.sum(x_ref[...].astype(acc_dtype), axis=1, keepdims=True)
    part = part.astype(o_ref.dtype)

    @pl.when(k == 0)
    def _():
        o_ref[...] = part

    @pl.when(k != 0)
    def _():
        o_ref[...] = o_ref[...] + part


def _sum_c_scratch_kernel(x_ref, o_ref, acc_ref):
    # Multi-step C reduction for reduced dtypes: accumulate in a wide VMEM scratch.
    k = pl.program_id(2)
    part = jnp.sum(x_ref[...].astype(acc_ref.dtype), axis=1, keepdims=True)

    @pl.when(k == 0)
    def _():
        acc_ref[...] = part

    @pl.when(k != 0)
    def _():
        acc_ref[...] = acc_ref[...] + part

    @pl.when(k == pl.num_programs(2) - 1)
    def _():
        o_ref[...] = acc_ref[...].astype(o_ref.dtype)


def _sum_dim1_pallas(x, block_bytes_override=None):
    shape = x.shape
    n, c = int(shape[0]), int(shape[1])
    rest = tuple(int(d) for d in shape[2:])
    s = 1
    for d in rest:
        s *= d
    s = max(s, 1)

    dtype = x.dtype
    itemsize = jnp.dtype(dtype).itemsize
    acc_dt = _acc_dtype(dtype)
    sub = _sublane_tile(dtype)

    vmem_cap, num_tc = _tpu_params()
    vmem_limit = int(min(vmem_cap * 3 // 4, 100 * 1024 * 1024))
    # Per-generation block target: bigger blocks on 128 MiB-VMEM chips (v5e/v6e).
    target = 16 * 1024 * 1024 if vmem_cap >= 100 * 1024 * 1024 else 8 * 1024 * 1024
    if block_bytes_override is not None:
        target = int(block_bytes_override)

    aligned = (s % _LANE == 0)

    if aligned:
        # Lane-dense channel-major view: (N, C, S_rows, 128); C is a major block axis
        # so the reduction is plain VPU adds over full (sb, 128) vregs.
        s_rows = s // _LANE
        x_view = x.reshape(n, c, s_rows, _LANE)
        row_bytes = _LANE * itemsize
        slab_bytes = s_rows * row_bytes                 # one channel's spatial slab
        if slab_bytes > target:
            # A single channel slab exceeds the target: tile the spatial rows.
            ct = 1
            sb = max(sub, (target // row_bytes) // sub * sub)
            sb = min(sb, s_rows)
        else:
            # Keep the full spatial extent, shrink C (exact divisor) to fit.
            ct = _largest_divisor_leq(c, max(1, target // slab_bytes))
            sb = s_rows
        nb = 1
        if ct == c and sb == s_rows:
            nb = _largest_divisor_leq(n, max(1, target // max(1, c * slab_bytes)))
        # Dual-TensorCore chips (v7x): keep >= 2 parallel grid steps.
        if num_tc >= 2 and (n // nb) * _cdiv(s_rows, sb) < 2:
            if n >= 2:
                nb = _largest_divisor_leq(n, n // 2)
            elif sb == s_rows and s_rows >= 2 * sub:
                sb = max(sub, _round_up(_cdiv(s_rows, 2), sub))

        grid = (n // nb, _cdiv(s_rows, sb), c // ct)
        in_block = (nb, ct, sb, _LANE)
        in_map = lambda i, j, k: (i, k, j, 0)
        out_block = (nb, 1, sb, _LANE)
        out_map = lambda i, j, k: (i, 0, j, 0)
        out_view_shape = (n, 1, s_rows, _LANE)
    else:
        # Non-128-aligned spatial size: keep S as a full (or 128-chunked) last dim,
        # C (= full extent) on the sublane axis.  No padding pass; the small tail is
        # handled by masked edge stores inside the kernel's writeback.
        x_view = x.reshape(n, c, s)
        c_rows = _round_up(c, sub)
        full_bytes = c_rows * _round_up(s, _LANE) * itemsize
        if full_bytes <= target:
            s_chunk = s
            nb = _largest_divisor_leq(n, max(1, target // max(1, full_bytes)))
        else:
            nb = 1
            s_chunk = max(_LANE, (target // (c_rows * itemsize)) // _LANE * _LANE)
            if s_chunk >= s:
                s_chunk = s
        if num_tc >= 2 and (n // nb) * _cdiv(s, s_chunk) < 2:
            if n >= 2:
                nb = _largest_divisor_leq(n, n // 2)
            elif s_chunk == s and s > _LANE:
                s_chunk = max(_LANE, _round_up(_cdiv(s, 2), _LANE))

        grid = (n // nb, _cdiv(s, s_chunk), 1)
        in_block = (nb, c, s_chunk)
        in_map = lambda i, j, k: (i, 0, j)
        out_block = (nb, 1, s_chunk)
        out_map = lambda i, j, k: (i, 0, j)
        out_view_shape = (n, 1, s)

    c_steps = grid[2]
    use_direct = (c_steps == 1) or (jnp.dtype(dtype) == jnp.dtype(acc_dt))
    if use_direct:
        kernel_fn = functools.partial(_sum_c_direct_kernel, acc_dt)
        scratch_shapes = []
    else:
        kernel_fn = _sum_c_scratch_kernel
        scratch_shapes = [pltpu.VMEM(out_block, acc_dt)]

    # Triple-buffer the streaming input when VMEM comfortably allows it.
    buffer_count = None
    if hasattr(pl, "Buffered"):
        in_bytes = _vmem_block_bytes(in_block, dtype)
        out_bytes = _vmem_block_bytes(out_block, dtype)
        acc_bytes = 0 if use_direct else _vmem_block_bytes(out_block, acc_dt)
        if 3 * in_bytes + 2 * out_bytes + acc_bytes + (4 << 20) <= vmem_limit:
            buffer_count = 3

    cost = pl.CostEstimate(
        flops=int(n * c * s),
        transcendentals=0,
        bytes_accessed=int(n * c * s * itemsize + n * s * itemsize),
    )

    def _invoke(buffers):
        spec_kwargs = {}
        if buffers is not None:
            spec_kwargs["pipeline_mode"] = pl.Buffered(buffers)
        return pl.pallas_call(
            kernel_fn,
            out_shape=jax.ShapeDtypeStruct(out_view_shape, dtype),
            grid_spec=pltpu.PrefetchScalarGridSpec(
                num_scalar_prefetch=0,
                grid=grid,
                in_specs=[pl.BlockSpec(in_block, in_map, **spec_kwargs)],
                out_specs=pl.BlockSpec(out_block, out_map),
                scratch_shapes=scratch_shapes,
            ),
            compiler_params=pltpu.CompilerParams(
                dimension_semantics=("parallel", "parallel", "arbitrary"),
                vmem_limit_bytes=vmem_limit,
            ),
            cost_estimate=cost,
        )(x_view)

    if buffer_count is not None:
        try:
            out = _invoke(buffer_count)
        except Exception:
            out = _invoke(None)     # fall back to default double buffering
    else:
        out = _invoke(None)

    return out.reshape((n,) + rest)


def sum_proxy(x, *, force_pallas=False):
    """Equivalent of SumProxy.forward: torch.sum(x, dim=1, keepdim=False)."""
    if not force_pallas and x.size * jnp.dtype(x.dtype).itemsize < _PALLAS_MIN_BYTES:
        # Tiny inputs: kernel-launch + pipeline overhead dominates; let XLA fuse it.
        return jnp.sum(x, axis=1)
    return _sum_dim1_pallas(x)


if __name__ == "__main__":
    # SumProxy has no learnable parameters; only inputs are needed.
    key = jax.random.PRNGKey(0)

    # 1) Primary check: 4D input with a 128-aligned spatial size (lane-dense path).
    x = jax.random.normal(key, (2, 4, 16, 16), dtype=jnp.float32)
    out = jax.block_until_ready(sum_proxy(x, force_pallas=True))
    ref = jnp.sum(x, axis=1)
    assert out.shape == ref.shape and out.dtype == ref.dtype
    assert jnp.allclose(out, ref, atol=1e-5, rtol=1e-5)

    # 2) 5D input with a non-128-aligned spatial tail (ProxyNet feeds the proxy a
    #    (num_way, num_shot, C, H, W) tensor) — exercises the unaligned, pad-free path.
    x2 = jax.random.normal(jax.random.PRNGKey(1), (3, 5, 2, 7, 9), dtype=jnp.float32)
    out2 = jax.block_until_ready(sum_proxy(x2, force_pallas=True))
    ref2 = jnp.sum(x2, axis=1)
    assert out2.shape == ref2.shape
    assert jnp.allclose(out2, ref2, atol=1e-5, rtol=1e-5)

    # 3) Multi-step C reduction (tiny forced block budget):
    #    f32 -> accumulate directly in the output block across the C grid axis.
    x3 = jax.random.normal(jax.random.PRNGKey(2), (2, 8, 2, 128), dtype=jnp.float32)
    out3 = jax.block_until_ready(_sum_dim1_pallas(x3, block_bytes_override=2048))
    assert jnp.allclose(out3, jnp.sum(x3, axis=1), atol=1e-5, rtol=1e-5)

    #    bf16 -> multi-step with an f32 VMEM scratch accumulator.
    x4 = jax.random.normal(jax.random.PRNGKey(3), (2, 8, 2, 128), dtype=jnp.bfloat16)
    out4 = jax.block_until_ready(_sum_dim1_pallas(x4, block_bytes_override=2048))
    ref4 = jnp.sum(x4.astype(jnp.float32), axis=1).astype(jnp.bfloat16)
    assert out4.dtype == jnp.bfloat16
    assert jnp.allclose(out4.astype(jnp.float32), ref4.astype(jnp.float32),
                        atol=5e-2, rtol=5e-2)

    print("KERNEL_OK")
</pallas_src>

<mosaic_0001>
module attributes {stable_mosaic.version = 11 : i64} {
  func.func @_sum_c_direct_kernel(%arg0: i32, %arg1: i32, %arg2: i32, %arg3: memref<1x4x2x128xf32, #tpu.memory_space<vmem>>, %arg4: memref<1x1x2x128xf32, #tpu.memory_space<vmem>>) attributes {dimension_semantics = [#tpu.dimension_semantics<parallel>, #tpu.dimension_semantics<parallel>, #tpu.dimension_semantics<arbitrary>], iteration_bounds = array<i64: 2, 1, 1>, scalar_prefetch = 0 : i64, scratch_operands = 0 : i64, tpu.core_type = #tpu.core_type<tc>, window_params = [{transform_indices = @transform_0, window_bounds = array<i64: 1, 4, 2, 128>}, {transform_indices = @transform_1, window_bounds = array<i64: 1, 1, 2, 128>}]} {
    %c0 = arith.constant 0 : index
    %c0_0 = arith.constant 0 : index
    %c0_1 = arith.constant 0 : index
    %c0_2 = arith.constant 0 : index
    %0 = vector.load %arg3[%c0, %c0_0, %c0_1, %c0_2] : memref<1x4x2x128xf32, #tpu.memory_space<vmem>>, vector<1x4x2x128xf32>
    %cst = arith.constant dense<0.000000e+00> : vector<1x2x128xf32>
    %1 = vector.multi_reduction <add>, %0, %cst [1] : vector<1x4x2x128xf32> to vector<1x2x128xf32>
    %2 = vector.shape_cast %1 : vector<1x2x128xf32> to vector<1x1x2x128xf32>
    %c0_i32 = arith.constant 0 : i32
    %3 = arith.cmpi eq, %arg2, %c0_i32 : i32
    %4 = arith.extui %3 : i1 to i32
    %c0_i32_3 = arith.constant 0 : i32
    %5 = arith.cmpi ne, %4, %c0_i32_3 : i32
    scf.if %5 {
      %c0_6 = arith.constant 0 : index
      %c0_7 = arith.constant 0 : index
      %c0_8 = arith.constant 0 : index
      %c0_9 = arith.constant 0 : index
      %9 = vector.load %arg4[%c0_6, %c0_7, %c0_8, %c0_9] : memref<1x1x2x128xf32, #tpu.memory_space<vmem>>, vector<1x1x2x128xf32>
      tpu.vector_store %arg4[%c0_6, %c0_7, %c0_8, %c0_9], %2 {strides = array<i32>} : memref<1x1x2x128xf32, #tpu.memory_space<vmem>>, vector<1x1x2x128xf32>,
    } else {
    }
    %c0_i32_4 = arith.constant 0 : i32
    %6 = arith.cmpi ne, %arg2, %c0_i32_4 : i32
    %7 = arith.extui %6 : i1 to i32
    %c0_i32_5 = arith.constant 0 : i32
    %8 = arith.cmpi ne, %7, %c0_i32_5 : i32
    scf.if %8 {
      %c0_6 = arith.constant 0 : index
      %c0_7 = arith.constant 0 : index
      %c0_8 = arith.constant 0 : index
      %c0_9 = arith.constant 0 : index
      %9 = vector.load %arg4[%c0_6, %c0_7, %c0_8, %c0_9] : memref<1x1x2x128xf32, #tpu.memory_space<vmem>>, vector<1x1x2x128xf32>
      %10 = arith.addf %9, %2 : vector<1x1x2x128xf32>
      %c0_10 = arith.constant 0 : index
      %c0_11 = arith.constant 0 : index
      %c0_12 = arith.constant 0 : index
      %c0_13 = arith.constant 0 : index
      %11 = vector.load %arg4[%c0_10, %c0_11, %c0_12, %c0_13] : memref<1x1x2x128xf32, #tpu.memory_space<vmem>>, vector<1x1x2x128xf32>
      tpu.vector_store %arg4[%c0_10, %c0_11, %c0_12, %c0_13], %10 {strides = array<i32>} : memref<1x1x2x128xf32, #tpu.memory_space<vmem>>, vector<1x1x2x128xf32>,
    } else {
    }
    return
  }
  func.func @transform_0(%arg0: i32, %arg1: i32, %arg2: i32) -> (i32, i32, i32, i32) {
    %c0_i32 = arith.constant 0 : i32
    %c0_i32_0 = arith.constant 0 : i32
    return %arg0, %arg2, %arg1, %c0_i32 : i32, i32, i32, i32
  }
  func.func @transform_1(%arg0: i32, %arg1: i32, %arg2: i32) -> (i32, i32, i32, i32) {
    %c0_i32 = arith.constant 0 : i32
    %c0_i32_0 = arith.constant 0 : i32
    %c0_i32_1 = arith.constant 0 : i32
    return %arg0, %c0_i32, %arg1, %c0_i32_0 : i32, i32, i32, i32
  }
}

</mosaic_0001>

<bundles_post_ra>
// kernel: tpu_custom_call.1
= control target key start
LH: loop header
LB: loop body
LE: loop exit
PB: predicated region body
PF: predicated region fallthrough
CT: control target
= control target key end

     0   :  { %6 = vsyncpa [#allocation3], 0  ;;  %s670_s0 = inlined_call_operand.hbm [shape: f32[2,4,2,128], index: 0, kind: input, shape index: {}]   ;;  %s671_s1 = inlined_call_operand.hbm [shape: f32[2,1,2,128], index: 1, kind: output, shape index: {}]  }
   0x1   :  { %8 = vsyncpa [#allocation3 + $0x1], 0 }
   0x2   :  { %9 = vsyncpa [#allocation4], 0 }
   0x3   :  { %11 = vsyncpa [#allocation4 + $0x1], 0  ;;  %s496_s6 = smov 0   ;;  %s498_s7 = smov 0  }
   0x4   :  { %s500_s8 = smov 0   ;;  %s502_s9 = smov 0  }
   0x5   :  { %s504_s10 = smov 0   ;;  %s506_s11 = smov 0  }
   0x6 LB: > { %s289_s12 = sadd.s32 4294967295, %s480_s11   ;;  %s290_s13 = sadd.s32 4294967294, %s480_s11   ;;  %s480_s11 = sphi %s506_s11, %s17_s11   ;;  %s476_s10 = sphi %s504_s10, %s686_s10   ;;  %s472_s9 = sphi %s502_s9, %s685_s9   ;;  %s468_s8 = sphi %s500_s8, %s684_s8   ;;  %s464_s7 = sphi %s498_s7, %s683_s7   ;;  %s460_s6 = sphi %s496_s6, %s682_s6  }
   0x7   : > { %s36_s14 = sadd.s32 1, %s476_s10  ;;  %s47_s15 = sadd.s32 1, %s468_s8 }
   0x8   : > { %p38_p0 = scmp.ge.s32.totalorder %s36_s14, 2  ;;  %p54_p1 = scmp.ne.s32.totalorder %s468_s8, %s464_s7 }
   0x9   : > { %p55_p2 = scmp.eq.s32.totalorder %s480_s11, 0  ;;  %p60_p3 = scmp.ne.s32.totalorder %s464_s7, %s460_s6 }
   0xa   : > { %s688_s14 = smov (%p38_p0, %s36_s14), 0  ;;  %p61_p5 = scmp.eq.s32.totalorder %s289_s12, 0 }
   0xb   : > { %p537_p4 = por %p55_p2, %p54_p1  ;;  %s40_s17 = ssub.s32 %s476_s10, %s688_s14 }
   0xc   : > { %p86_p6 = scmp.eq.s32.totalorder %s289_s12, 1  ;;  %p45_p7 = scmp.eq.s32.totalorder %s40_s17, 0 }
   0xd   : > { %p543_p8 = por %p61_p5, %p60_p3  ;;  %p92_p10 = scmp.eq.s32.totalorder %s290_s13, 1 }
   0xe   : > { %p547_p9 = por %p86_p6, %p54_p1  ;;  %p316_p13 = scmp.lt.s32.totalorder %s480_s11, 2 }
   0xf   : > { %s552_s20 = scalar_select %p45_p7, %s468_s8, %s47_s15  }
  0x10   : > { %s675_s19 = scalar_select %p547_p9, 1, 0 }
  0x11   : > { %p554_p11 = por %p92_p10, %p60_p3  ;;  %s112_s22 = sand.u32 1, %s468_s8  }
  0x12   : > { %s293_s23 = sshll.u32 %s112_s22, 3  ;;  %s303_s24 = sshll.u32 %s476_s10, 7 }
  0x13   : > { %s676_s21 = scalar_select %p554_p11, 1, 0 }
  0x14   : > { %s565_s27 = scalar_lea.hbm %s670_s0, %s303_s24  ;;  %s116_s28 = scalar_lea.vmem [#allocation2], %s293_s23 }
  0x15   : > { %s126_s29 = sshll.u32 %s116_s28, 4  ;;  %p571_p0 = pnand %p316_p13, %p537_p4  ;;  %s567_s29 = int_to_ptr.vmem [resolvable:$true] %s126_s29 }
  0x16   : > { %s576_s2 = scalar_lea.sflag [#allocation3], %s112_s22  ;;  %s368_s3 = scalar_lea.hbm %s565_s27, 128 }
  0x17   : > { %p369_p2 = scmp.ne.s32.totalorder %s565_s27, %s368_s3  ;;  %p370_p3 = pneg %p571_p0 }
  0x18   : > { %s373_s12 = scalar_lea.hbm %s670_s0, 256  ;;  %p374_p4 = scmp.lt.u32.totalorder %s565_s27, %s670_s0 }
  0x19   : > { %p371_p5 = pnand %p370_p3, %p369_p2  ;;  %p375_p7 = scmp.lt.u32.totalorder %s373_s12, %s368_s3 }
  0x1a   : > { %p377_p13 = scmp.lt.u32.totalorder %s368_s3, %s565_s27 }
  0x1b   : > { %p372_p6 = pneg %p371_p5  ;;  %p376_p10 = por %p375_p7, %p374_p4 }
  0x1d   : > { %p378_p12 = por %p377_p13, %p376_p10 }
  0x1f   : > { %p379_p1 = pnand %p378_p12, %p372_p6 }
  0x21   : > { %382 = shalt.err (!%p379_p1)
}
  0x22   : > { %s383_s16 = scalar_lea.vmem %s567_s29, 128  ;;  %s482_s17 = smov [#allocation2]  }
  0x23   : > { %p384_p2 = scmp.ne.s32.totalorder %s567_s29, %s383_s16  ;;  %s388_s22 = sshll.u32 %s482_s17, 4  ;;  %s389_s22 = int_to_ptr.vmem [resolvable:$false] %s388_s22 }
  0x24   : > { %s390_s23 = scalar_lea.vmem %s389_s22, 256  ;;  %p391_p9 = scmp.lt.s32.totalorder %s567_s29, %s389_s22 }
  0x25   : > { %p386_p5 = pnand %p384_p2, %p370_p3  ;;  %p392_p4 = scmp.lt.s32.totalorder %s390_s23, %s383_s16 }
  0x27   : > { %p387_p11 = pneg %p386_p5  ;;  %p393_p7 = por %p392_p4, %p391_p9 }
  0x29   : > { %p394_p10 = pnand %p393_p7, %p387_p11 }
  0x2b   : > { %397 = shalt.err (!%p394_p10)
}
  0x2c   : > { %s483_s24 = smov 32   ;;  %s484_s25 = smov 2  }
  0x2d   : > { %311 = dma.hbm_to_vmem [thread:$0]  (!%p571_p0), %s565_s27, 128, %s567_s29, %s576_s2, %s483_s24, %s483_s24, %s484_s25  }
  0x2e   : > { %p134_p12 = scmp.lt.s32.totalorder %s480_s11, 3  ;;  %p678_p1 = scmp.ge.s32.totalorder %s480_s11, 1 }
  0x30   : > { %p135_p3 = pnand %p678_p1, %p134_p12 }
  0x31   : > { %s608_s26 = sand.u32 (!%p135_p3), 1, %s464_s7  }
  0x32   : > { %138 = sbr.rel (%p135_p3) target bundleno = 84 (0x54), region = 24  ;;  %s297_s28 = sshll.u32 (!%p135_p3), %s608_s26, 3 }
  0x33   : > { %s141_s3 = scalar_lea.sflag (!%p135_p3), [#allocation3], %s608_s26  ;;  %s144_s4 = scalar_lea.vmem (!%p135_p3), [#allocation2], %s297_s28 }
  0x39   : > { %451 = dma.done.wait (%p543_p8), %s141_s3, 128  }
  0x3a   : > { %453 = vsyncadd (%p543_p8), %s141_s3, 4294967168  ;;  %s298_s27 = sshll.u32 %s608_s26, 1  ;;  %vm168_vm0 = vcmask 1041408   ;;  %v164_v0 = vld [vmem:[%s144_s4] sm:$0x3]  ;;  %s300_s2 = sshll.u32 %s472_s9, 5 }
  0x3b   : > { %v165_v1 = vld [vmem:[%s144_s4 + $0x2] sm:$0x3]  ;;  %v166_v2 = vld [vmem:[%s144_s4 + $0x4] sm:$0x3]  ;;  %v167_v3 = vld [vmem:[%s144_s4 + $0x6] sm:$0x3]  ;;  %s623_s12 = scalar_lea.hbm %s671_s1, %s300_s2 }
  0x3c   : > { %v169_v4 = vsel %vm168_vm0, %v164_v0, 0.0  ;;  %v170_v5 = vsel %vm168_vm0, %v165_v1, 0.0  ;;  %v172_v6 = vsel %vm168_vm0, %v166_v2, 0.0  ;;  %v174_v8 = vsel %vm168_vm0, %v167_v3, 0.0  ;;  %s162_s29 = scalar_lea.vmem [#allocation5], %s298_s27  ;;  %s189_s13 = scalar_lea.sflag [#allocation4], %s608_s26 }
  0x3d   : > { %v171_v7 = vadd.f32 %v170_v5, %v169_v4  ;;  %s203_s30 = sshll.u32 %s162_s29, 4  ;;  %p679_p9 = scmp.ne.s32.totalorder %s675_s19, 0  ;;  %s618_s30 = int_to_ptr.vmem [resolvable:$true] %s203_s30 }
  0x3e   : > { %s398_s15 = scalar_lea.vmem %s618_s30, 32  ;;  %s485_s9 = smov [#allocation5]  }
  0x3f   : > { %v173_v9 = vadd.f32 %v172_v6, %v171_v7  ;;  %p399_p8 = scmp.ne.s32.totalorder %s618_s30, %s398_s15  ;;  %s402_s16 = sshll.u32 %s485_s9, 4  ;;  %s403_s16 = int_to_ptr.vmem [resolvable:$false] %s402_s16 }
  0x40   : > { %s404_s17 = scalar_lea.vmem %s403_s16, 64  ;;  %p405_p6 = scmp.lt.s32.totalorder %s618_s30, %s403_s16 }
  0x41   : > { %v175_v10 = vadd.f32 %v174_v8, %v173_v9  ;;  %p400_p11 = pnand %p399_p8, %p679_p9  ;;  %p406_p13 = scmp.lt.s32.totalorder %s404_s17, %s398_s15 }
  0x43   : > { %180 = vst [vmem:[%s162_s29] sm:$0x3] %v175_v10  ;;  %p401_p0 = pneg %p400_p11  ;;  %p407_p2 = por %p406_p13, %p405_p6 }
  0x45   : > { %p408_p5 = pnand %p407_p2, %p401_p0 }
  0x47   : > { %411 = shalt.err (!%p408_p5)
}
  0x48   : > { %s412_s22 = scalar_lea.hbm %s623_s12, 32  ;;  %s416_s25 = scalar_lea.hbm %s671_s1, 64 }
  0x49   : > { %p413_p4 = scmp.ne.s32.totalorder %s623_s12, %s412_s22  ;;  %p417_p12 = scmp.lt.u32.totalorder %s623_s12, %s671_s1 }
  0x4a   : > { %p418_p1 = scmp.lt.u32.totalorder %s416_s25, %s412_s22  ;;  %p420_p8 = scmp.lt.u32.totalorder %s412_s22, %s623_s12 }
  0x4b   : > { %p414_p7 = pnand %p413_p4, %p679_p9 }
  0x4c   : > { %p419_p3 = por %p418_p1, %p417_p12 }
  0x4d   : > { %p415_p10 = pneg %p414_p7 }
  0x4e   : > { %p421_p11 = por %p420_p8, %p419_p3 }
  0x50   : > { %p422_p0 = pnand %p421_p11, %p415_p10 }
  0x52   : > { %425 = shalt.err (!%p422_p0)
}
  0x53   : > { %306 = dma.vmem_to_hbm [thread:$0]  (%p679_p9), %s618_s30, 32, %s623_s12, %s189_s13  }
  0x54 PF: > { %s215_s3 = sand.u32 1, %s460_s6   ;;  %p680_p6 = scmp.ne.s32.totalorder %s676_s21, 0 }
  0x55   : > { %p681_p13 = scmp.ge.s32.totalorder %s480_s11, 2  ;;  %s216_s4 = scalar_lea.sflag [#allocation4], %s215_s3 }
  0x57   : > { %p313_p2 = pnand %p681_p13, %p680_p6 }
  0x59   : > { %455 = dma.done.wait (!%p313_p2), %s216_s4, 32  }
  0x5a   : > { %457 = vsyncadd (!%p313_p2), %s216_s4, 4294967264  ;;  %s17_s11 = sadd.s32 1, %s480_s11   ;;  %s682_s6 = smov %s464_s7 }
  0x5b   : > { %p14_p5 = scmp.ge.s32.totalorder %s17_s11, 4   ;;  %s683_s7 = smov %s468_s8 }
  0x5c   : > { %s684_s8 = smov %s552_s20  ;;  %s685_s9 = smov %s476_s10 }
  0x5d   : > { %s686_s10 = smov %s688_s14  ;;  %16 = sbr.rel (!%p14_p5) target bundleno = 6 (0x6), region = 77 }
  0x64   :  { %221 = vsyncpa [#allocation3], 1 }
  0x65   :  { %223 = vsyncpa [#allocation3 + $0x1], 1 }
  0x66   :  { %224 = vsyncpa [#allocation4], 1 }
  0x67   :  { %226 = vsyncpa [#allocation4 + $0x1], 1 }

</bundles_post_ra>
